<compile_context>
chip_gen: v7x
topology: tpu7x:2x2x1
jax: 0.10.0
libtpu: 0.0.40
codegen_flags: <defaults>
</compile_context>

<pallas_src>
import math
from functools import partial

import jax
import jax.numpy as jnp
from jax.experimental import pallas as pl
from jax.experimental.pallas import tpu as pltpu


# ---------------------------------------------------------------------------
# pe buffer (mirrors the PyTorch __init__); pre-scaled by 0.1, pre-cast.
# ---------------------------------------------------------------------------
def make_positional_encoding(d_model, max_len=5000, scale=0.1, dtype=jnp.float32):
    position = jnp.arange(0, max_len, dtype=jnp.float32)[:, None]            # (L, 1)
    div_term = jnp.exp(
        jnp.arange(0, d_model, 2, dtype=jnp.float32)
        * (-math.log(10000.0) / d_model)
    )                                                                         # (D/2,)
    angles = position * div_term                                              # (L, D/2)
    pe = jnp.zeros((max_len, d_model), dtype=jnp.float32)
    pe = pe.at[:, 0::2].set(jnp.sin(angles))
    pe = pe.at[:, 1::2].set(jnp.cos(angles))
    pe = pe * jnp.float32(scale)
    return pe[:, None, :].astype(dtype)      # (max_len, 1, d_model), like PyTorch


# ---------------------------------------------------------------------------
# Kernels
# ---------------------------------------------------------------------------
def _pe_add_kernel_3d(x_ref, pe_ref, o_ref):
    # x: (ts, tb, D)   pe: (ts, 1, D) -> broadcast over the size-1 sublane dim
    o_ref[...] = x_ref[...] + pe_ref[...]


def _pe_add_kernel_2d(x_ref, pe_ref, o_ref, *, batch):
    # x: (rows, B*D)   pe: (rows, 1, D) -> lane-tile pe across the batch fold
    pe_row = pe_ref[...][:, 0, :]                      # (rows, D)
    o_ref[...] = x_ref[...] + jnp.tile(pe_row, (1, batch))


# ---------------------------------------------------------------------------
# Generation / tiling heuristics
# ---------------------------------------------------------------------------
def _tpu_generation():
    """Best-effort (generation, tensorcores-per-chip) from the device kind."""
    try:
        kind = jax.devices()[0].device_kind.lower()
    except Exception:
        return "unknown", 1
    if "v5 lite" in kind or "v5e" in kind or "v5lite" in kind:
        return "v5e", 1
    if "v6" in kind:
        return "v6e", 1
    if "v7" in kind or "7x" in kind:
        return "v7x", 2
    return "unknown", 1


# Per-step block budget (covers x block + pe block); chosen so the
# double-buffered working set 2*(x_in + out + pe) <= 4*budget fits the scoped
# VMEM default of each generation (16 MiB v5e, 32 MiB v6e/v7x).
_TARGET_BYTES = {"v5e": 3 << 20, "v6e": 4 << 20, "v7x": 6 << 20, "unknown": 3 << 20}


def _sublane(dtype):
    # sublane granularity: 8 for 4-byte, 16 for 2-byte, 32 for 1-byte dtypes
    return max(8, 32 // jnp.dtype(dtype).itemsize)


def _choose_tiles_3d(S, B, D, dtype, target_bytes, num_tc):
    item = jnp.dtype(dtype).itemsize
    sub = _sublane(dtype)
    row_bytes = (B + 1) * D * item            # one x seq-row (full batch) + pe row
    if B * D * item > target_bytes and B > sub:
        # Forced batch tiling (huge B*D). tb aligned to dtype sublane granularity.
        tb = (target_bytes // (D * item)) // sub * sub
        tb = int(min(max(sub, tb), B))
        ts = 1
    else:
        tb = B                                 # invariant: shrink ts before tb
        ts = int(min(max(1, target_bytes // row_bytes), S))
        # 2-TC parts: guarantee >= 2 seq tiles so megacore has work to split.
        if num_tc >= 2 and ts >= S and S >= 16:
            ts = int(pl.cdiv(S, 2))
    return int(ts), int(tb)


def _choose_rows_2d(S, B, D, dtype, target_bytes, num_tc):
    item = jnp.dtype(dtype).itemsize
    sub = _sublane(dtype)
    rows = (target_bytes // ((B + 1) * D * item)) // sub * sub
    rows = max(sub, rows)
    if rows >= S:
        rows = S
        if num_tc >= 2 and S >= 2 * sub:       # 2-TC parts: allow a 2-tile split
            half = ((int(pl.cdiv(S, 2)) + sub - 1) // sub) * sub
            if half < S:
                rows = half
    return int(rows)


# ---------------------------------------------------------------------------
# Forward
# ---------------------------------------------------------------------------
def positional_encoding_forward(x, pe, *, donate_x=False):
    """x: (seq, batch, d_model); pe: (max_len, 1, d_model), pre-scaled by 0.1.

    donate_x=True requests in-place x += pe (only beneficial when the caller
    actually donates x's buffer; x must not be read afterwards).
    Dropout is evaluated in inference mode (identity).
    """
    S, B, D = x.shape
    if pe.dtype != x.dtype:                    # normally a no-op (pre-cast at build)
        pe = pe.astype(x.dtype)

    gen, num_tc = _tpu_generation()
    target = _TARGET_BYTES[gen]
    item = jnp.dtype(x.dtype).itemsize
    sub = _sublane(x.dtype)
    alias = {0: 0} if donate_x else {}

    # Lane-dense path: d_model not a multiple of 128 but batch*d_model is.
    lane_fold = (D % 128 != 0) and ((B * D) % 128 == 0) \
        and (sub * (B + 1) * D * item <= target)

    if lane_fold:
        rows = _choose_rows_2d(S, B, D, x.dtype, target, num_tc)
        x2 = x.reshape(S, B * D)               # contiguous trailing dims -> free
        out = pl.pallas_call(
            partial(_pe_add_kernel_2d, batch=B),
            out_shape=jax.ShapeDtypeStruct((S, B * D), x.dtype),
            grid=(pl.cdiv(S, rows),),
            in_specs=[
                pl.BlockSpec((rows, B * D), lambda i: (i, 0)),
                pl.BlockSpec((rows, 1, D), lambda i: (i, 0, 0)),
            ],
            out_specs=pl.BlockSpec((rows, B * D), lambda i: (i, 0)),
            input_output_aliases=alias,
            compiler_params=pltpu.CompilerParams(
                dimension_semantics=("parallel",)),
        )(x2, pe)
        return out.reshape(S, B, D)

    ts, tb = _choose_tiles_3d(S, B, D, x.dtype, target, num_tc)
    out = pl.pallas_call(
        _pe_add_kernel_3d,
        out_shape=jax.ShapeDtypeStruct((S, B, D), x.dtype),
        grid=(pl.cdiv(S, ts), pl.cdiv(B, tb)),   # batch innermost -> pe tile reused
        in_specs=[
            pl.BlockSpec((ts, tb, D), lambda i, j: (i, j, 0)),
            pl.BlockSpec((ts, 1, D), lambda i, j: (i, 0, 0)),   # seq tile only
        ],
        out_specs=pl.BlockSpec((ts, tb, D), lambda i, j: (i, j, 0)),
        input_output_aliases=alias,
        compiler_params=pltpu.CompilerParams(
            dimension_semantics=("parallel", "parallel")),
    )(x, pe)
    return out


if __name__ == "__main__":
    key = jax.random.PRNGKey(0)
    k1, k2 = jax.random.split(key)
    max_len = 64

    # Case 1: narrow model (d_model=32), batch folded into lanes (B*D == 128).
    S1, B1, D1 = 8, 4, 32
    pe1 = make_positional_encoding(D1, max_len=max_len, dtype=jnp.float32)
    x1 = jax.random.normal(k1, (S1, B1, D1), dtype=jnp.float32)
    ref1 = x1 + pe1[:S1]                               # pe1 already has the 0.1 scale
    out1 = jax.block_until_ready(positional_encoding_forward(x1, pe1))
    assert out1.shape == (S1, B1, D1)
    assert jnp.allclose(out1, ref1, atol=1e-6), "mismatch vs reference (2-D path)"

    # Case 2: lane-dense model (d_model=128), plain 3-D tiled path with opt-in
    # aliasing.  Reference is computed BEFORE the call since x2 is aliased.
    S2, B2, D2 = 8, 2, 128
    pe2 = make_positional_encoding(D2, max_len=max_len, dtype=jnp.float32)
    x2 = jax.random.normal(k2, (S2, B2, D2), dtype=jnp.float32)
    ref2 = jax.block_until_ready(x2 + pe2[:S2])
    out2 = jax.block_until_ready(positional_encoding_forward(x2, pe2, donate_x=True))
    assert out2.shape == (S2, B2, D2)
    assert jnp.allclose(out2, ref2, atol=1e-6), "mismatch vs reference (3-D path)"

    print("KERNEL_OK")
</pallas_src>

<mosaic_0001>
module attributes {stable_mosaic.version = 11 : i64} {
  func.func @_pe_add_kernel_2d(%arg0: i32, %arg1: memref<8x128xf32, #tpu.memory_space<vmem>>, %arg2: memref<8x1x32xf32, #tpu.memory_space<vmem>>, %arg3: memref<8x128xf32, #tpu.memory_space<vmem>>) attributes {dimension_semantics = [#tpu.dimension_semantics<parallel>], iteration_bounds = array<i64: 1>, scalar_prefetch = 0 : i64, scratch_operands = 0 : i64, tpu.core_type = #tpu.core_type<tc>, window_params = [{transform_indices = @transform_0, window_bounds = array<i64: 8, 128>}, {transform_indices = @transform_1, window_bounds = array<i64: 8, 1, 32>}, {transform_indices = @transform_2, window_bounds = array<i64: 8, 128>}]} {
    %c0 = arith.constant 0 : index
    %c0_0 = arith.constant 0 : index
    %c0_1 = arith.constant 0 : index
    %0 = vector.load %arg2[%c0, %c0_0, %c0_1] : memref<8x1x32xf32, #tpu.memory_space<vmem>>, vector<8x1x32xf32>
    %1 = vector.shape_cast %0 : vector<8x1x32xf32> to vector<8x32xf32>
    %c0_2 = arith.constant 0 : index
    %c0_3 = arith.constant 0 : index
    %2 = vector.load %arg1[%c0_2, %c0_3] : memref<8x128xf32, #tpu.memory_space<vmem>>, vector<8x128xf32>
    %3 = tpu.concatenate %1, %1, %1, %1 in 1 : vector<8x32xf32>, vector<8x32xf32>, vector<8x32xf32>, vector<8x32xf32> -> vector<8x128xf32>
    %4 = arith.addf %2, %3 : vector<8x128xf32>
    %c0_4 = arith.constant 0 : index
    %c0_5 = arith.constant 0 : index
    %5 = vector.load %arg3[%c0_4, %c0_5] : memref<8x128xf32, #tpu.memory_space<vmem>>, vector<8x128xf32>
    tpu.vector_store %arg3[%c0_4, %c0_5], %4 {strides = array<i32>} : memref<8x128xf32, #tpu.memory_space<vmem>>, vector<8x128xf32>,
    return
  }
  func.func @transform_0(%arg0: i32) -> (i32, i32) {
    %c0_i32 = arith.constant 0 : i32
    %c0_i32_0 = arith.constant 0 : i32
    return %arg0, %c0_i32 : i32, i32
  }
  func.func @transform_1(%arg0: i32) -> (i32, i32, i32) {
    %c0_i32 = arith.constant 0 : i32
    %c0_i32_0 = arith.constant 0 : i32
    %c0_i32_1 = arith.constant 0 : i32
    return %arg0, %c0_i32, %c0_i32_0 : i32, i32, i32
  }
  func.func @transform_2(%arg0: i32) -> (i32, i32) {
    %c0_i32 = arith.constant 0 : i32
    %c0_i32_0 = arith.constant 0 : i32
    return %arg0, %c0_i32 : i32, i32
  }
}

</mosaic_0001>

<bundles_post_ra>
// kernel: tpu_custom_call.1
= control target key start
LH: loop header
LB: loop body
LE: loop exit
PB: predicated region body
PF: predicated region fallthrough
CT: control target
= control target key end

     0   :  { %v36_v3 = vlaneseq  ;;  %v139_v9 = vmov 1966171168   ;;  %s198_s0 = inlined_call_operand.vmem [shape: f32[8,128], index: 0, kind: input, shape index: {}]   ;;  %s199_s1 = inlined_call_operand.vmem [shape: f32[64,1,32], index: 1, kind: input, shape index: {}]   ;;  %s200_s2 = inlined_call_operand.hbm [shape: f32[8,128], index: 2, kind: output, shape index: {}]  }
   0x1   :  { %v12_v0 = vld [vmem:[%s199_s1] sm:$0x1]  ;;  %v13_v1 = vld [vmem:[%s199_s1 + $0x1] sm:$0x1]  ;;  %v14_v2 = vld [vmem:[%s199_s1 + $0x2] sm:$0x1]  ;;  %v34_v10 = vunpack.c.l.s4 %v139_v9 }
   0x2   :  { %v15_v4 = vld [vmem:[%s199_s1 + $0x3] sm:$0x1]  ;;  %v16_v5 = vld [vmem:[%s199_s1 + $0x4] sm:$0x1]  ;;  %v17_v6 = vld [vmem:[%s199_s1 + $0x5] sm:$0x1] }
   0x3   :  { %v18_v7 = vld [vmem:[%s199_s1 + $0x6] sm:$0x1]  ;;  %v19_v8 = vld [vmem:[%s199_s1 + $0x7] sm:$0x1]  ;;  %v37_v11 = vshrl.u32 %v36_v3, 7 }
   0x4   :  { %7 = vsyncpa [#allocation3], 0  ;;  %v29_v12 = vcombine.low %v12_v0, %v13_v1  ;;  %v30_v13 = vcombine.low %v14_v2, %v15_v4  ;;  %v31_v14 = vcombine.low %v16_v5, %v17_v6  ;;  %v32_v15 = vcombine.low %v18_v7, %v19_v8  ;;  %s140_s1 = smov 32   ;;  %s141_s25 = smov 96   ;;  %v20_v31 = vld [vmem:[%s198_s0] sm:$0xff] }
   0x5   :  { %v35_v16 = vunpack.c.0.s8 %v34_v10  ;;  %s142_s26 = smov 64   ;;  %vm88_vm0 = vcmask 261120   ;;  %vm90_vm1 = vcmask 523264   ;;  %vm92_vm2 = vcmask 785408   ;;  %s143_s29 = smov [#allocation2]  }
   0x6   :  { %s102_s30 = sshll.u32 %s143_s29, 4  ;;  %s103_s30 = int_to_ptr.vmem [resolvable:$true] %s102_s30 }
   0x7   :  { %v38_v17 = vsub.s32 %v35_v16, %v37_v11  ;;  %s115_s3 = scalar_lea.vmem %s103_s30, 128  ;;  %p120_p1 = scmp.lt.s32.totalorder %s103_s30, %s103_s30 }
   0x8   :  { %p116_p0 = scmp.ne.s32.totalorder %s103_s30, %s115_s3  ;;  %p121_p2 = scmp.lt.s32.totalorder %s115_s3, %s115_s3 }
   0x9   :  { %v39_v18 = vrot.slane %v29_v12, %v38_v17  ;;  %v46_v19 = vrot.slane %v30_v13, %v38_v17  ;;  %v53_v20 = vrot.slane %v31_v14, %v38_v17  ;;  %v60_v21 = vrot.slane %v32_v15, %v38_v17 }
   0xa   :  { %p122_p3 = por %p121_p2, %p120_p1 }
   0xb   :  { %v61_v22 = vcombine.low %v39_v18, %v46_v19  ;;  %v62_v23 = vcombine.low %v53_v20, %v60_v21 }
   0xc   :  { %p123_p4 = pnand %p122_p3, %p116_p0 }
   0xd   :  { %v69_v24 = vrot.slane %v61_v22, %v38_v17  ;;  %v76_v25 = vrot.slane %v62_v23, %v38_v17 }
   0xf   :  { %v77_v26 = vcombine.low %v69_v24, %v76_v25 }
  0x11   :  { %79 = vrot.lane.b32.xlu0 %v77_v26, %s140_s1  ;;  %85 = vrot.lane.b32.xlu1 %v77_v26, %s141_s25 }
  0x15   :  { %82 = vrot.lane.b32.xlu0 %v77_v26, %s142_s26 }
  0x83   :  { %v80_v27 = vpop.permute.xlu0 %79  ;;  %v86_v28 = vpop.permute.xlu1 %85 }
  0x84   :  { %v89_v29 = vsel %vm88_vm0, %v77_v26, %v80_v27 }
  0x87   :  { %v83_v30 = vpop.permute.xlu0 %82 }
  0x88   :  { %v91_v32 = vsel %vm90_vm1, %v89_v29, %v83_v30 }
  0x89   :  { %v93_v33 = vsel %vm92_vm2, %v91_v32, %v86_v28 }
  0x8a   :  { %v94_v34 = vadd.f32 %v93_v33, %v20_v31 }
  0x8c   :  { %95 = vst [vmem:[#allocation2] sm:$0xff] %v94_v34 }
  0x8d   :  { %126 = shalt.err (!%p123_p4)
}
  0x8e   :  { %s127_s6 = scalar_lea.hbm %s200_s2, 128 }
  0x8f   :  { %p128_p5 = scmp.ne.s32.totalorder %s200_s2, %s127_s6  ;;  %p131_p6 = scmp.lt.u32.totalorder %s127_s6, %s200_s2 }
  0x91   :  { %p133_p7 = pnand %p131_p6, %p128_p5 }
  0x93   :  { %136 = shalt.err (!%p133_p7)
}
  0x94   :  { %105 = dma.vmem_to_hbm [thread:$0]  %s103_s30, 128, %s200_s2, [#allocation3]  }
  0x95   :  { %137 = dma.done.wait [#allocation3], 128  }
  0x96   :  { %138 = vsyncadd [#allocation3], 4294967168 }
  0x97   :  { %109 = vsyncpa [#allocation3], 1 }

</bundles_post_ra>
